<compile_context>
chip_gen: v5e
topology: v5e:2x2
jax: 0.10.0
libtpu: 0.0.40
codegen_flags: <defaults>
</compile_context>

<pallas_src>
import jax
import jax.numpy as jnp
from jax.experimental import pallas as pl
from jax.experimental.pallas import tpu as pltpu


LANE = 128                      # pad matmul output (lane) dims to this
DEFAULT_TILE_M = 256            # rows/tile for kernel A at test sizes;
                                # sweep 512-1024 on v5e/v6e, keep <=512 on v7x
VMEM_LIMIT = 32 * 1024 * 1024   # explicit scoped-VMEM budget (safe on v5e..v7x)


def _round_up(x, m):
    return ((x + m - 1) // m) * m


def _pick_tile(m, target=DEFAULT_TILE_M):
    for cand in (target, target // 2, 128, 64, 32, 16, 8):
        if cand <= m and m % cand == 0:
            return cand
    return m


# ----------------------------------------------------------------------------
# Kernel A: fused (bn1 -> relu -> 1x1 conv1) + (shortcut 1x1 conv on raw x).
# One read of the input tile feeds both matmuls.
# ----------------------------------------------------------------------------
def _conv1_shortcut_kernel(x_ref, s1_ref, t1_ref, w1_ref, wsc_ref,
                           y1_ref, res_ref):
    x = x_ref[...]                                           # (TM, CIN) f32
    a = jnp.maximum(x * s1_ref[...] + t1_ref[...], 0.0)      # bn1 + relu
    y1 = jnp.dot(a.astype(jnp.bfloat16), w1_ref[...],
                 preferred_element_type=jnp.float32)
    y1_ref[...] = y1.astype(y1_ref.dtype)                    # bf16 intermediate
    res_ref[...] = jnp.dot(x.astype(jnp.bfloat16), wsc_ref[...],
                           preferred_element_type=jnp.float32)


def _conv1_shortcut(xs2d, s1, t1, w1p, wscp, *, tile_m):
    m, cin = xs2d.shape
    cbp = w1p.shape[1]
    coutp = wscp.shape[1]
    return pl.pallas_call(
        _conv1_shortcut_kernel,
        out_shape=(jax.ShapeDtypeStruct((m, cbp), jnp.bfloat16),
                   jax.ShapeDtypeStruct((m, coutp), jnp.float32)),
        grid=(m // tile_m,),
        in_specs=[
            pl.BlockSpec((tile_m, cin), lambda i: (i, 0)),
            pl.BlockSpec((1, cin), lambda i: (0, 0)),
            pl.BlockSpec((1, cin), lambda i: (0, 0)),
            pl.BlockSpec((cin, cbp), lambda i: (0, 0)),
            pl.BlockSpec((cin, coutp), lambda i: (0, 0)),
        ],
        out_specs=[
            pl.BlockSpec((tile_m, cbp), lambda i: (i, 0)),
            pl.BlockSpec((tile_m, coutp), lambda i: (i, 0)),
        ],
        compiler_params=pltpu.CompilerParams(
            dimension_semantics=("parallel",),
            vmem_limit_bytes=VMEM_LIMIT),
    )(xs2d, s1, t1, w1p, wscp)


# ----------------------------------------------------------------------------
# Kernel B: fused (bn2 -> relu -> 3x3 conv, pad 1) -> (bn3 -> relu -> 1x1
# conv3 + bias + residual).  One image per grid step; the 3x3 output stays in
# a VMEM accumulator and never round-trips HBM.
# ----------------------------------------------------------------------------
def _conv2_conv3_kernel(y1_ref, s2_ref, t2_ref, w2_ref, s3_ref, t3_ref,
                        w3_ref, b3_ref, res_ref, o_ref, pad_ref, acc_ref):
    _, hh, ww, cbp = y1_ref.shape
    coutp = o_ref.shape[-1]

    # bn2 + relu (f32 math; y1 arrives as bf16).
    a2 = jnp.maximum(y1_ref[...].astype(jnp.float32) * s2_ref[...]
                     + t2_ref[...], 0.0)

    # Zero only the 1-wide halo strips of the padded scratch, then write the
    # interior once.  Re-zeroed every step so the grid axis stays "parallel".
    pad_ref[:, 0:1, :, :] = jnp.zeros((1, 1, ww + 2, cbp), pad_ref.dtype)
    pad_ref[:, hh + 1:hh + 2, :, :] = jnp.zeros((1, 1, ww + 2, cbp), pad_ref.dtype)
    pad_ref[:, :, 0:1, :] = jnp.zeros((1, hh + 2, 1, cbp), pad_ref.dtype)
    pad_ref[:, :, ww + 1:ww + 2, :] = jnp.zeros((1, hh + 2, 1, cbp), pad_ref.dtype)
    pad_ref[:, 1:hh + 1, 1:ww + 1, :] = a2

    # 3x3 conv as 9 shifted K=cbp matmuls, accumulated in a VMEM f32 scratch.
    acc_ref[...] = jnp.zeros_like(acc_ref)
    for kh in range(3):
        for kw in range(3):
            patch = pad_ref[:, kh:kh + hh, kw:kw + ww, :].reshape(hh * ww, cbp)
            acc_ref[...] += jnp.dot(patch.astype(jnp.bfloat16), w2_ref[kh, kw],
                                    preferred_element_type=jnp.float32)

    # bn3 -> relu -> 1x1 conv3 + bias + residual, all in VMEM.
    a3 = jnp.maximum(acc_ref[...] * s3_ref[...] + t3_ref[...], 0.0)
    out = jnp.dot(a3.astype(jnp.bfloat16), w3_ref[...],
                  preferred_element_type=jnp.float32)
    out = out + b3_ref[...] + res_ref[...].reshape(hh * ww, coutp)
    o_ref[...] = out.reshape(1, hh, ww, coutp)


def _conv2_conv3(y1, s2, t2, w2p, s3, t3, w3p, b3, res):
    n, hh, ww, cbp = y1.shape
    coutp = w3p.shape[1]
    return pl.pallas_call(
        _conv2_conv3_kernel,
        out_shape=jax.ShapeDtypeStruct((n, hh, ww, coutp), jnp.float32),
        grid=(n,),
        in_specs=[
            pl.BlockSpec((1, hh, ww, cbp), lambda i: (i, 0, 0, 0)),
            pl.BlockSpec((1, cbp), lambda i: (0, 0)),
            pl.BlockSpec((1, cbp), lambda i: (0, 0)),
            pl.BlockSpec((3, 3, cbp, cbp), lambda i: (0, 0, 0, 0)),
            pl.BlockSpec((1, cbp), lambda i: (0, 0)),
            pl.BlockSpec((1, cbp), lambda i: (0, 0)),
            pl.BlockSpec((cbp, coutp), lambda i: (0, 0)),
            pl.BlockSpec((1, coutp), lambda i: (0, 0)),
            pl.BlockSpec((1, hh, ww, coutp), lambda i: (i, 0, 0, 0)),
        ],
        out_specs=pl.BlockSpec((1, hh, ww, coutp), lambda i: (i, 0, 0, 0)),
        scratch_shapes=[
            pltpu.VMEM((1, hh + 2, ww + 2, cbp), jnp.float32),   # padded act
            pltpu.VMEM((hh * ww, cbp), jnp.float32),             # conv2 acc
        ],
        compiler_params=pltpu.CompilerParams(
            dimension_semantics=("parallel",),
            vmem_limit_bytes=VMEM_LIMIT),
    )(y1, s2, t2, w2p, s3, t3, w3p, b3, res)


# ----------------------------------------------------------------------------
# Bottleneck forward (Pallas path).  Input/output are NCHW like PyTorch.
# ----------------------------------------------------------------------------
def bottleneck_forward(x_nchw, params, stride=1):
    x = jnp.transpose(x_nchw, (0, 2, 3, 1)).astype(jnp.float32)   # -> NHWC
    n, h, w, cin = x.shape
    cb = params["w1"].shape[1]
    cout = params["w3"].shape[1]
    cbp = _round_up(cb, LANE)
    coutp = _round_up(cout, LANE)

    # TODO(synk): fold the stride subsample + NCHW<->NHWC transposes into the
    # kernel index_maps instead of wrapper-side XLA layout passes.
    xs = x[:, ::stride, ::stride, :]
    ho, wo = xs.shape[1], xs.shape[2]
    m = n * ho * wo
    xs2d = xs.reshape(m, cin)

    # Lane-pad weights to 128 output channels and cast to bf16.
    w1p = jnp.zeros((cin, cbp), jnp.bfloat16).at[:, :cb].set(
        params["w1"].astype(jnp.bfloat16))
    if params.get("wsc") is not None:
        wsc = params["wsc"]
    else:
        wsc = jnp.eye(cin, dtype=jnp.float32)        # identity shortcut
    wscp = jnp.zeros((cin, coutp), jnp.bfloat16).at[:, :cout].set(
        wsc.astype(jnp.bfloat16))
    w2p = jnp.zeros((3, 3, cbp, cbp), jnp.bfloat16).at[:, :, :cb, :cb].set(
        params["w2"].astype(jnp.bfloat16))
    w3p = jnp.zeros((cbp, coutp), jnp.bfloat16).at[:cb, :cout].set(
        params["w3"].astype(jnp.bfloat16))

    def pad1(v, c):
        return jnp.zeros((1, c), jnp.float32).at[0, :v.shape[0]].set(v)

    s1 = params["s1"].reshape(1, cin)
    t1 = params["t1"].reshape(1, cin)
    s2, t2 = pad1(params["s2"], cbp), pad1(params["t2"], cbp)
    s3, t3 = pad1(params["s3"], cbp), pad1(params["t3"], cbp)
    b3 = pad1(params["b3"], coutp)

    tile_m = _pick_tile(m)
    y1_2d, res2d = _conv1_shortcut(xs2d, s1, t1, w1p, wscp, tile_m=tile_m)
    y1 = y1_2d.reshape(n, ho, wo, cbp)
    res = res2d.reshape(n, ho, wo, coutp)

    out = _conv2_conv3(y1, s2, t2, w2p, s3, t3, w3p, b3, res)
    out = out[..., :cout]                        # drop lane padding (fused
    return jnp.transpose(out, (0, 3, 1, 2))      # into the NCHW transpose)


# ----------------------------------------------------------------------------
# Pure-JAX reference (for correctness check)
# ----------------------------------------------------------------------------
def bottleneck_reference(x_nchw, params, stride=1):
    x = jnp.transpose(x_nchw, (0, 2, 3, 1))
    cin = x.shape[-1]
    cb = params["w1"].shape[1]
    cout = params["w3"].shape[1]
    dn = ("NHWC", "HWIO", "NHWC")

    def conv(v, w, s, pad):
        return jax.lax.conv_general_dilated(v, w, (s, s), pad,
                                            dimension_numbers=dn)

    a = jax.nn.relu(x * params["s1"] + params["t1"])
    y = conv(a, params["w1"].reshape(1, 1, cin, cb), stride, "VALID")
    a = jax.nn.relu(y * params["s2"] + params["t2"])
    y = conv(a, params["w2"], 1, ((1, 1), (1, 1)))
    a = jax.nn.relu(y * params["s3"] + params["t3"])
    y = conv(a, params["w3"].reshape(1, 1, cb, cout), 1, "VALID") + params["b3"]
    if params.get("wsc") is not None:
        res = conv(x, params["wsc"].reshape(1, 1, cin, cout), stride, "VALID")
    else:
        res = x[:, ::stride, ::stride, :]
    return jnp.transpose(y + res, (0, 3, 1, 2))


# ----------------------------------------------------------------------------
# Deterministic parameter construction (Bottleneck(inplanes, outplanes))
# ----------------------------------------------------------------------------
def make_params(key, inplanes, outplanes, expansion=4, eps=1e-5):
    cb = outplanes // expansion
    ks = jax.random.split(key, 16)

    def bn_affine(kg, kb, km, kv, c):
        gamma = jax.random.uniform(kg, (c,), jnp.float32, 0.8, 1.2)
        beta = 0.1 * jax.random.normal(kb, (c,), jnp.float32)
        mean = 0.1 * jax.random.normal(km, (c,), jnp.float32)
        var = jax.random.uniform(kv, (c,), jnp.float32, 0.5, 1.5)
        scale = gamma / jnp.sqrt(var + eps)
        shift = beta - mean * scale
        return scale, shift

    s1, t1 = bn_affine(ks[0], ks[1], ks[2], ks[3], inplanes)
    s2, t2 = bn_affine(ks[4], ks[5], ks[6], ks[7], cb)
    s3, t3 = bn_affine(ks[8], ks[9], ks[10], ks[11], cb)

    w1 = 0.1 * jax.random.normal(ks[12], (inplanes, cb), jnp.float32)
    w2 = 0.1 * jax.random.normal(ks[13], (3, 3, cb, cb), jnp.float32)
    w3 = 0.1 * jax.random.normal(ks[14], (cb, outplanes), jnp.float32)
    b3 = 0.1 * jax.random.normal(ks[15], (outplanes,), jnp.float32)
    wsc = (0.1 * jax.random.normal(jax.random.fold_in(key, 99),
                                   (inplanes, outplanes), jnp.float32)
           if inplanes != outplanes else None)

    return dict(s1=s1, t1=t1, s2=s2, t2=t2, s3=s3, t3=t3,
                w1=w1, w2=w2, w3=w3, b3=b3, wsc=wsc)


if __name__ == "__main__":
    key = jax.random.PRNGKey(0)

    configs = [
        # (N, inplanes, outplanes, H, W, stride)
        (2, 16, 32, 16, 16, 1),   # conv shortcut
        (2, 32, 32, 16, 16, 1),   # identity shortcut
        (2, 16, 64, 16, 16, 2),   # strided, conv shortcut
    ]
    for idx, (n, cin, cout, h, w, stride) in enumerate(configs):
        k_x, k_p = jax.random.split(jax.random.fold_in(key, idx))
        x = jax.random.normal(k_x, (n, cin, h, w), jnp.float32)   # NCHW
        params = make_params(k_p, cin, cout)

        out = jax.block_until_ready(bottleneck_forward(x, params, stride=stride))
        ref = bottleneck_reference(x, params, stride=stride)

        assert out.shape == (n, cout, h // stride, w // stride), out.shape
        # bf16 MXU inputs (f32 accumulate) -> slightly looser tolerance.
        err = float(jnp.max(jnp.abs(out - ref)))
        assert jnp.allclose(out, ref, rtol=3e-2, atol=3e-2), (idx, err)

    print("KERNEL_OK")
</pallas_src>

<mosaic_0001>
module attributes {stable_mosaic.version = 11 : i64} {
  func.func @_conv1_shortcut_kernel(%arg0: i32, %arg1: memref<256x16xf32, #tpu.memory_space<vmem>>, %arg2: memref<1x16xf32, #tpu.memory_space<vmem>>, %arg3: memref<1x16xf32, #tpu.memory_space<vmem>>, %arg4: memref<16x128xbf16, #tpu.memory_space<vmem>>, %arg5: memref<16x128xbf16, #tpu.memory_space<vmem>>, %arg6: memref<256x128xbf16, #tpu.memory_space<vmem>>, %arg7: memref<256x128xf32, #tpu.memory_space<vmem>>) attributes {dimension_semantics = [#tpu.dimension_semantics<parallel>], iteration_bounds = array<i64: 2>, scalar_prefetch = 0 : i64, scratch_operands = 0 : i64, tpu.core_type = #tpu.core_type<tc>, window_params = [{transform_indices = @transform_0, window_bounds = array<i64: 256, 16>}, {pipeline_mode = #tpu.pipeline_mode<synchronous>, transform_indices = @transform_1, window_bounds = array<i64: 1, 16>}, {pipeline_mode = #tpu.pipeline_mode<synchronous>, transform_indices = @transform_2, window_bounds = array<i64: 1, 16>}, {pipeline_mode = #tpu.pipeline_mode<synchronous>, transform_indices = @transform_3, window_bounds = array<i64: 16, 128>}, {pipeline_mode = #tpu.pipeline_mode<synchronous>, transform_indices = @transform_4, window_bounds = array<i64: 16, 128>}, {transform_indices = @transform_5, window_bounds = array<i64: 256, 128>}, {transform_indices = @transform_6, window_bounds = array<i64: 256, 128>}]} {
    %c0 = arith.constant 0 : index
    %c0_0 = arith.constant 0 : index
    %0 = vector.load %arg1[%c0, %c0_0] : memref<256x16xf32, #tpu.memory_space<vmem>>, vector<256x16xf32>
    %c0_1 = arith.constant 0 : index
    %c0_2 = arith.constant 0 : index
    %1 = vector.load %arg2[%c0_1, %c0_2] : memref<1x16xf32, #tpu.memory_space<vmem>>, vector<1x16xf32>
    %2 = vector.broadcast %1 : vector<1x16xf32> to vector<256x16xf32>
    %3 = arith.mulf %0, %2 : vector<256x16xf32>
    %c0_3 = arith.constant 0 : index
    %c0_4 = arith.constant 0 : index
    %4 = vector.load %arg3[%c0_3, %c0_4] : memref<1x16xf32, #tpu.memory_space<vmem>>, vector<1x16xf32>
    %5 = vector.broadcast %4 : vector<1x16xf32> to vector<256x16xf32>
    %6 = arith.addf %3, %5 : vector<256x16xf32>
    %cst = arith.constant 0.000000e+00 : f32
    %7 = vector.broadcast %cst : f32 to vector<256x16xf32>
    %8 = arith.maximumf %6, %7 : vector<256x16xf32>
    %9 = arith.truncf %8 : vector<256x16xf32> to vector<256x16xbf16>
    %c0_5 = arith.constant 0 : index
    %c0_6 = arith.constant 0 : index
    %10 = vector.load %arg4[%c0_5, %c0_6] : memref<16x128xbf16, #tpu.memory_space<vmem>>, vector<16x128xbf16>
    %cst_7 = arith.constant dense<0.000000e+00> : vector<256x128xf32>
    %11 = tpu.matmul %9, %10, %cst_7 {dimension_numbers = #tpu.dot_dimension_numbers<[1], [0], [0], [1], [0, 0, 1, 1], [], []>} : vector<256x16xbf16>, vector<16x128xbf16>, vector<256x128xf32> -> vector<256x128xf32>
    %12 = arith.truncf %11 : vector<256x128xf32> to vector<256x128xbf16>
    %c0_8 = arith.constant 0 : index
    %c0_9 = arith.constant 0 : index
    %13 = vector.load %arg6[%c0_8, %c0_9] : memref<256x128xbf16, #tpu.memory_space<vmem>>, vector<256x128xbf16>
    tpu.vector_store %arg6[%c0_8, %c0_9], %12 {strides = array<i32>} : memref<256x128xbf16, #tpu.memory_space<vmem>>, vector<256x128xbf16>,
    %14 = arith.truncf %0 : vector<256x16xf32> to vector<256x16xbf16>
    %c0_10 = arith.constant 0 : index
    %c0_11 = arith.constant 0 : index
    %15 = vector.load %arg5[%c0_10, %c0_11] : memref<16x128xbf16, #tpu.memory_space<vmem>>, vector<16x128xbf16>
    %cst_12 = arith.constant dense<0.000000e+00> : vector<256x128xf32>
    %16 = tpu.matmul %14, %15, %cst_12 {dimension_numbers = #tpu.dot_dimension_numbers<[1], [0], [0], [1], [0, 0, 1, 1], [], []>} : vector<256x16xbf16>, vector<16x128xbf16>, vector<256x128xf32> -> vector<256x128xf32>
    %c0_13 = arith.constant 0 : index
    %c0_14 = arith.constant 0 : index
    %17 = vector.load %arg7[%c0_13, %c0_14] : memref<256x128xf32, #tpu.memory_space<vmem>>, vector<256x128xf32>
    tpu.vector_store %arg7[%c0_13, %c0_14], %16 {strides = array<i32>} : memref<256x128xf32, #tpu.memory_space<vmem>>, vector<256x128xf32>,
    return
  }
  func.func @transform_0(%arg0: i32) -> (i32, i32) {
    %c0_i32 = arith.constant 0 : i32
    %c0_i32_0 = arith.constant 0 : i32
    return %arg0, %c0_i32 : i32, i32
  }
  func.func @transform_1(%arg0: i32) -> (i32, i32) {
    %c0_i32 = arith.constant 0 : i32
    %c0_i32_0 = arith.constant 0 : i32
    %c0_i32_1 = arith.constant 0 : i32
    return %c0_i32, %c0_i32_0 : i32, i32
  }
  func.func @transform_2(%arg0: i32) -> (i32, i32) {
    %c0_i32 = arith.constant 0 : i32
    %c0_i32_0 = arith.constant 0 : i32
    %c0_i32_1 = arith.constant 0 : i32
    return %c0_i32, %c0_i32_0 : i32, i32
  }
  func.func @transform_3(%arg0: i32) -> (i32, i32) {
    %c0_i32 = arith.constant 0 : i32
    %c0_i32_0 = arith.constant 0 : i32
    %c0_i32_1 = arith.constant 0 : i32
    return %c0_i32, %c0_i32_0 : i32, i32
  }
  func.func @transform_4(%arg0: i32) -> (i32, i32) {
    %c0_i32 = arith.constant 0 : i32
    %c0_i32_0 = arith.constant 0 : i32
    %c0_i32_1 = arith.constant 0 : i32
    return %c0_i32, %c0_i32_0 : i32, i32
  }
  func.func @transform_5(%arg0: i32) -> (i32, i32) {
    %c0_i32 = arith.constant 0 : i32
    %c0_i32_0 = arith.constant 0 : i32
    return %arg0, %c0_i32 : i32, i32
  }
  func.func @transform_6(%arg0: i32) -> (i32, i32) {
    %c0_i32 = arith.constant 0 : i32
    %c0_i32_0 = arith.constant 0 : i32
    return %arg0, %c0_i32 : i32, i32
  }
}

</mosaic_0001>

<bundles_post_ra>
// kernel: tpu_custom_call.1
= control target key start
LH: loop header
LB: loop body
LE: loop exit
PB: predicated region body
PF: predicated region fallthrough
CT: control target
= control target key end

     0   :  { %s1600_s0 = inlined_call_operand.vmem [shape: f32[512,16], index: 0, kind: input, shape index: {}]   ;;  %s1601_s1 = inlined_call_operand.vmem [shape: f32[1,16], index: 1, kind: input, shape index: {}]   ;;  %s1602_s2 = inlined_call_operand.vmem [shape: f32[1,16], index: 2, kind: input, shape index: {}]   ;;  %s1603_s3 = inlined_call_operand.vmem [shape: bf16[16,128], index: 3, kind: input, shape index: {}]   ;;  %s1604_s4 = inlined_call_operand.vmem [shape: bf16[16,128], index: 4, kind: input, shape index: {}]   ;;  %s1605_s5 = inlined_call_operand.hbm [shape: bf16[512,128], index: 5, kind: output, shape index: {0}]   ;;  %s1606_s6 = inlined_call_operand.hbm [shape: f32[512,128], index: 6, kind: output, shape index: {1}]  }
   0x1   :  { %1607 = sst [smem:[#allocation8_spill]] %s1600_s0 }
   0x2   :  { %12 = vsyncpa [#allocation3], 0 }
   0x3   :  { %14 = vsyncpa [#allocation3 + $0x1], 0 }
   0x4   :  { %15 = vsyncpa [#allocation5], 0 }
   0x5   :  { %17 = vsyncpa [#allocation5 + $0x1], 0  ;;  %s1296_s21 = smov 0   ;;  %s1298_s22 = smov 0  }
   0x6   :  { %s1300_s23 = smov 0   ;;  %s1302_s24 = smov 0  }
   0x7 LB: > { %s1317_s25 = sadd.s32 4294967295, %s1255_s24   ;;  %s954_s26 = sadd.s32 4294967294, %s1255_s24   ;;  %s1255_s24 = sphi %s1302_s24, %s1614_s24   ;;  %s1251_s23 = sphi %s1300_s23, %s1613_s23   ;;  %s1247_s22 = sphi %s1298_s22, %s1612_s22   ;;  %s1243_s21 = sphi %s1296_s21, %s1611_s21  }
   0x8   : > { %s1321_s27 = sadd.s32 1, %s1255_s24   ;;  %s140_s28 = sadd.s32 1, %s1251_s23 }
   0x9   : > { %s137_s29 = ssub.s32 %s1255_s24, %s1321_s27  ;;  %p150_p0 = scmp.ne.s32.totalorder %s1251_s23, %s1247_s22 }
   0xa   : > { %p138_p1 = scmp.eq.s32.totalorder %s137_s29, 0  ;;  %p151_p2 = scmp.eq.s32.totalorder %s1317_s25, 1 }
   0xb   : > { %p156_p3 = scmp.ne.s32.totalorder %s1247_s22, %s1243_s21  ;;  %p157_p4 = scmp.eq.s32.totalorder %s954_s26, 1 }
   0xc   : > { %s1332_s30 = scalar_select %p138_p1, %s1251_s23, %s140_s28  }
   0xd   : > { %p1334_p5 = por %p151_p2, %p150_p0  ;;  %p1338_p6 = por %p157_p4, %p156_p3 }
   0xe   : > { %p957_p7 = scmp.ge.s32.totalorder %s1255_s24, 1  ;;  %p222_p8 = scmp.lt.s32.totalorder %s1255_s24, 3 }
  0x10   : > { %p223_p9 = pnand %p957_p7, %p222_p8 }
  0x11   : > { %s960_s11 = sshll.u32 (!%p223_p9), %s1317_s25, 5  ;;  %s1610_s0 = sld [smem:[#allocation8_spill]] (!%p223_p9) }
  0x12   : > { %226 = sbr.rel (%p223_p9) target bundleno = 301 (0x12d), region = 40  ;;  %p258_p10 = scmp.lt.s32.totalorder (!%p223_p9), %s960_s11, 63 }
  0x13   : > { %s1494_s28 = sand.u32 (!%p223_p9), 1, %s1247_s22   ;;  %s1013_s12 = sshll.u32 (!%p223_p9), %s1317_s25, 8 }
  0x14   : > { %s959_s29 = sshll.u32 (!%p223_p9), %s1494_s28, 8  ;;  %s958_s10 = sshll.u32 (!%p223_p9), %s1494_s28, 7 }
  0x15   : > { %s1498_s9 = scalar_lea.vmem (!%p223_p9), [#allocation4], %s959_s29  ;;  %s855_s15 = scalar_lea.hbm (!%p223_p9), %s1606_s6, %s1013_s12 }
  0x16   : > { %s858_s17 = sshll.u32 (!%p223_p9), %s855_s15, 4  ;;  %s1012_s18 = sshll.u32 (!%p223_p9), %s1317_s25, 7  ;;  %s859_s17 = int_to_ptr.hbm [resolvable:$true] %s858_s17 }
  0x17   : > { %v1011_v0 = vld [vmem:[%s1604_s4] sm:$0xff]  ;;  %s1616_s11 = smov (!%p258_p10, %s960_s11), 63  ;;  %vm426_vm0 = vcmask 130048   ;;  %s838_s26 = scalar_lea.hbm %s1605_s5, %s1012_s18 }
  0x18   : > { %v1010_v1 = vld [vmem:[%s1603_s3] sm:$0xff]  ;;  %1110 = vmatpush.bf16.msra.mxu3 %v1011_v0  ;;  %707 = vmatpush.bf16.msra.mxu1 %v1011_v0  ;;  %s961_s16 = sshll.u32 %s1616_s11, 3  ;;  %s1505_s11 = scalar_lea.vmem [#allocation2], %s958_s10 }
  0x19   : > { %482 = vmatpush.bf16.msra.mxu0 %v1010_v1  ;;  %1109 = vmatpush.bf16.msra.mxu2 %v1010_v1  ;;  %v1354_v2 = vld [vmem:[%s1601_s1] ss:$0 sm:$0xff]  ;;  %s1359_s19 = scalar_lea.vmem %s1610_s0, %s961_s16  ;;  %s856_s16 = sshll.u32 %s1498_s9, 4  ;;  %s857_s16 = int_to_ptr.vmem [resolvable:$true] %s856_s16 }
  0x1a   : > { %v1364_v3 = vld [vmem:[%s1602_s2] ss:$0 sm:$0xff]  ;;  %v283_v5 = vld [vmem:[%s1359_s19 + $0x88] sm:$0xff]  ;;  %v284_v22 = vld [vmem:[%s1359_s19 + $0x90] sm:$0xff]  ;;  %s827_s29 = scalar_lea.sflag [#allocation5], %s1494_s28  ;;  %s1175_s10 = sshra.s32 %s859_s17, 4  ;;  %s1176_s10 = int_to_ptr.hbm [resolvable:$true] %s1175_s10 }
  0x1b   : > { %v282_v4 = vld [vmem:[%s1359_s19 + $0x80] sm:$0xff]  ;;  %v319_v8 = vmul.f32 %v1354_v2, %v283_v5  ;;  %v267_v10 = vld [vmem:[%s1359_s19 + $0x8] sm:$0xff]  ;;  %v285_v23 = vld [vmem:[%s1359_s19 + $0x98] sm:$0xff]  ;;  %v320_v28 = vmul.f32 %v1354_v2, %v284_v22  ;;  %s1177_s12 = scalar_lea.hbm %s1176_s10, 256  ;;  %s1181_s14 = scalar_lea.hbm %s1606_s6, 512 }
  0x1c   : > { %v266_v6 = vld [vmem:[%s1359_s19] sm:$0xff]  ;;  %v318_v7 = vmul.f32 %v1354_v2, %v282_v4  ;;  %v636_v9 = vpack.c.bf16 %v283_v5, %v282_v4  ;;  %v303_v12 = vmul.f32 %v1354_v2, %v267_v10  ;;  %v268_v25 = vld [vmem:[%s1359_s19 + $0x10] sm:$0xff]  ;;  %v269_v26 = vld [vmem:[%s1359_s19 + $0x18] sm:$0xff]  ;;  %v321_v29 = vmul.f32 %v1354_v2, %v285_v23  ;;  %p1178_p11 = scmp.ne.s32.totalorder %s1176_s10, %s1177_s12  ;;  %p1182_p0 = scmp.lt.s32.totalorder %s1176_s10, %s1606_s6 }
  0x1d   : > { %v302_v11 = vmul.f32 %v1354_v2, %v266_v6  ;;  %v628_v13 = vpack.c.bf16 %v267_v10, %v266_v6  ;;  %v355_v16 = vadd.f32 %v1364_v3, %v319_v8  ;;  %v304_v30 = vmul.f32 %v1354_v2, %v268_v25  ;;  %v286_v44 = vld [vmem:[%s1359_s19 + $0xa0] sm:$0xff]  ;;  %v287_v45 = vld [vmem:[%s1359_s19 + $0xa8] sm:$0xff]  ;;  %v288_v0 = vld [vmem:[%s1359_s19 + $0xb0] sm:$0xff]  ;;  %p1183_p1 = scmp.lt.s32.totalorder %s1181_s14, %s1177_s12 }
  0x1e   : > { %994 = vmatmul.msk.bf16.vlgmr.msra.gmra.mxu3 %vm426_vm0, %v636_v9  ;;  %v354_v15 = vadd.f32 %v1364_v3, %v318_v7  ;;  %v339_v17 = vadd.f32 %v1364_v3, %v303_v12  ;;  %v305_v31 = vmul.f32 %v1354_v2, %v269_v26  ;;  %v356_v32 = vadd.f32 %v1364_v3, %v320_v28  ;;  %v270_v46 = vld [vmem:[%s1359_s19 + $0x20] sm:$0xff]  ;;  %v271_v47 = vld [vmem:[%s1359_s19 + $0x28] sm:$0xff]  ;;  %v289_v1 = vld [vmem:[%s1359_s19 + $0xb8] sm:$0xff]  ;;  %p1179_p12 = pnand %p1178_p11, %p1334_p5 }
  0x1f   : > { %v338_v14 = vadd.f32 %v1364_v3, %v302_v11  ;;  %986 = vmatmul.msk.bf16.vlgmr.msra.gmra.mxu1 %vm426_vm0, %v628_v13  ;;  %v387_v20 = vmax.f32 %v355_v16, 0.0  ;;  %v357_v33 = vadd.f32 %v1364_v3, %v321_v29  ;;  %v340_v34 = vadd.f32 %v1364_v3, %v304_v30  ;;  %v272_v4 = vld [vmem:[%s1359_s19 + $0x30] sm:$0xff]  ;;  %v273_v5 = vld [vmem:[%s1359_s19 + $0x38] sm:$0xff]  ;;  %p1184_p2 = por %p1183_p1, %p1182_p0 }
  0x20   : > { %v386_v19 = vmax.f32 %v354_v15, 0.0  ;;  %v371_v21 = vmax.f32 %v339_v17, 0.0  ;;  %v341_v35 = vadd.f32 %v1364_v3, %v305_v31  ;;  %v637_v36 = vpack.c.bf16 %v285_v23, %v284_v22  ;;  %v290_v22 = vld [vmem:[%s1359_s19 + $0xc0] sm:$0xff]  ;;  %v291_v23 = vld [vmem:[%s1359_s19 + $0xc8] sm:$0xff]  ;;  %p1180_p13 = pneg %p1179_p12 }
  0x21   : > { %v370_v18 = vmax.f32 %v338_v14, 0.0  ;;  %v629_v37 = vpack.c.bf16 %v269_v26, %v268_v25  ;;  %v388_v38 = vmax.f32 %v356_v32, 0.0  ;;  %v389_v39 = vmax.f32 %v357_v33, 0.0  ;;  %v275_v25 = vld [vmem:[%s1359_s19 + $0x48] sm:$0xff] }
  0x22   : > { %v410_v24 = vpack.c.bf16 %v387_v20, %v386_v19  ;;  %v372_v40 = vmax.f32 %v340_v34, 0.0  ;;  %v373_v41 = vmax.f32 %v341_v35, 0.0  ;;  %v322_v48 = vmul.f32 %v1354_v2, %v286_v44  ;;  %p1185_p3 = pnand %p1184_p2, %p1180_p13 }
  0x23   : > { %v402_v27 = vpack.c.bf16 %v371_v21, %v370_v18  ;;  %v411_v42 = vpack.c.bf16 %v389_v39, %v388_v38  ;;  %v323_v49 = vmul.f32 %v1354_v2, %v287_v45  ;;  %v306_v50 = vmul.f32 %v1354_v2, %v270_v46 }
  0x24   : > { %974 = vmatmul.msk.bf16.vlgmr.msra.gmra.mxu2 %vm426_vm0, %v410_v24  ;;  %v403_v43 = vpack.c.bf16 %v373_v41, %v372_v40  ;;  %v307_v51 = vmul.f32 %v1354_v2, %v271_v47  ;;  %v358_v52 = vadd.f32 %v1364_v3, %v322_v48  ;;  %v638_v56 = vpack.c.bf16 %v287_v45, %v286_v44  ;;  %v274_v24 = vld [vmem:[%s1359_s19 + $0x40] sm:$0xff]  ;;  %v276_v44 = vld [vmem:[%s1359_s19 + $0x50] sm:$0xff]  ;;  %v277_v45 = vld [vmem:[%s1359_s19 + $0x58] sm:$0xff] }
  0x25   : > { %966 = vmatmul.msk.bf16.vlgmr.msra.gmra.mxu0 %vm426_vm0, %v402_v27  ;;  %v359_v53 = vadd.f32 %v1364_v3, %v323_v49  ;;  %v342_v54 = vadd.f32 %v1364_v3, %v306_v50  ;;  %v630_v57 = vpack.c.bf16 %v271_v47, %v270_v46  ;;  %v324_v6 = vmul.f32 %v1354_v2, %v288_v0 }
  0x26   : > { %v343_v55 = vadd.f32 %v1364_v3, %v307_v51  ;;  %v390_v58 = vmax.f32 %v358_v52, 0.0  ;;  %v325_v7 = vmul.f32 %v1354_v2, %v289_v1  ;;  %v308_v8 = vmul.f32 %v1354_v2, %v272_v4 }
  0x27   : > { %v391_v59 = vmax.f32 %v359_v53, 0.0  ;;  %v374_v60 = vmax.f32 %v342_v54, 0.0  ;;  %v309_v9 = vmul.f32 %v1354_v2, %v273_v5  ;;  %v360_v10 = vadd.f32 %v1364_v3, %v324_v6 }
  0x28   : > { %v375_v61 = vmax.f32 %v343_v55, 0.0  ;;  %v361_v11 = vadd.f32 %v1364_v3, %v325_v7  ;;  %v344_v12 = vadd.f32 %v1364_v3, %v308_v8  ;;  %v639_v14 = vpack.c.bf16 %v289_v1, %v288_v0  ;;  %v278_v0 = vld [vmem:[%s1359_s19 + $0x60] sm:$0xff]  ;;  %v279_v1 = vld [vmem:[%s1359_s19 + $0x68] sm:$0xff] }
  0x29   : > { %v412_v62 = vpack.c.bf16 %v391_v59, %v390_v58  ;;  %v345_v13 = vadd.f32 %v1364_v3, %v309_v9  ;;  %v631_v15 = vpack.c.bf16 %v273_v5, %v272_v4  ;;  %v392_v16 = vmax.f32 %v360_v10, 0.0 }
  0x2a   : > { %v404_v63 = vpack.c.bf16 %v375_v61, %v374_v60  ;;  %v393_v17 = vmax.f32 %v361_v11, 0.0  ;;  %v376_v18 = vmax.f32 %v344_v12, 0.0  ;;  %v326_v26 = vmul.f32 %v1354_v2, %v290_v22 }
  0x2b   : > { %v377_v19 = vmax.f32 %v345_v13, 0.0  ;;  %v327_v27 = vmul.f32 %v1354_v2, %v291_v23  ;;  %v310_v28 = vmul.f32 %v1354_v2, %v274_v24  ;;  %v311_v29 = vmul.f32 %v1354_v2, %v275_v25 }
  0x2c   : > { %v413_v20 = vpack.c.bf16 %v393_v17, %v392_v16  ;;  %v362_v30 = vadd.f32 %v1364_v3, %v326_v26  ;;  %v640_v34 = vpack.c.bf16 %v291_v23, %v290_v22  ;;  %v632_v35 = vpack.c.bf16 %v275_v25, %v274_v24  ;;  %v280_v22 = vld [vmem:[%s1359_s19 + $0x70] sm:$0xff]  ;;  %v281_v23 = vld [vmem:[%s1359_s19 + $0x78] sm:$0xff] }
  0x2d   : > { %v405_v21 = vpack.c.bf16 %v377_v19, %v376_v18  ;;  %v363_v31 = vadd.f32 %v1364_v3, %v327_v27  ;;  %v346_v32 = vadd.f32 %v1364_v3, %v310_v28  ;;  %v347_v33 = vadd.f32 %v1364_v3, %v311_v29 }
  0x2e   : > { %995 = vmatmul.msk.bf16.gmra.mxu3 %vm426_vm0, %v637_v36  ;;  %v394_v36 = vmax.f32 %v362_v30, 0.0  ;;  %v312_v48 = vmul.f32 %v1354_v2, %v276_v44  ;;  %v313_v49 = vmul.f32 %v1354_v2, %v277_v45  ;;  %v633_v55 = vpack.c.bf16 %v277_v45, %v276_v44 }
  0x2f   : > { %987 = vmatmul.msk.bf16.gmra.mxu1 %vm426_vm0, %v629_v37  ;;  %v395_v37 = vmax.f32 %v363_v31, 0.0  ;;  %v378_v38 = vmax.f32 %v346_v32, 0.0  ;;  %v379_v39 = vmax.f32 %v347_v33, 0.0  ;;  %v314_v6 = vmul.f32 %v1354_v2, %v278_v0 }
  0x30   : > { %v348_v52 = vadd.f32 %v1364_v3, %v312_v48  ;;  %v349_v53 = vadd.f32 %v1364_v3, %v313_v49  ;;  %v315_v7 = vmul.f32 %v1354_v2, %v279_v1  ;;  %v634_v13 = vpack.c.bf16 %v279_v1, %v278_v0 }
  0x31   : > { %v414_v40 = vpack.c.bf16 %v395_v37, %v394_v36  ;;  %v406_v41 = vpack.c.bf16 %v379_v39, %v378_v38  ;;  %v350_v10 = vadd.f32 %v1364_v3, %v314_v6  ;;  %v316_v26 = vmul.f32 %v1354_v2, %v280_v22 }
  0x32   : > { %v380_v58 = vmax.f32 %v348_v52, 0.0  ;;  %v381_v59 = vmax.f32 %v349_v53, 0.0  ;;  %v351_v11 = vadd.f32 %v1364_v3, %v315_v7  ;;  %v317_v27 = vmul.f32 %v1354_v2, %v281_v23 }
  0x33   : > { %v382_v16 = vmax.f32 %v350_v10, 0.0  ;;  %v352_v30 = vadd.f32 %v1364_v3, %v316_v26  ;;  %v635_v33 = vpack.c.bf16 %v281_v23, %v280_v22 }
  0x34   : > { %975 = vmatmul.msk.bf16.gmra.mxu2 %vm426_vm0, %v411_v42  ;;  %v292_v42 = vld [vmem:[%s1359_s19 + $0xd0] sm:$0xff]  ;;  %v407_v61 = vpack.c.bf16 %v381_v59, %v380_v58  ;;  %v383_v17 = vmax.f32 %v351_v11, 0.0  ;;  %v353_v31 = vadd.f32 %v1364_v3, %v317_v27 }
  0x35   : > { %967 = vmatmul.msk.bf16.gmra.mxu0 %vm426_vm0, %v403_v43  ;;  %v293_v43 = vld [vmem:[%s1359_s19 + $0xd8] sm:$0xff]  ;;  %v328_v46 = vmul.f32 %v1354_v2, %v292_v42  ;;  %v384_v36 = vmax.f32 %v352_v30, 0.0 }
  0x36   : > { %v329_v47 = vmul.f32 %v1354_v2, %v293_v43  ;;  %v641_v54 = vpack.c.bf16 %v293_v43, %v292_v42  ;;  %v408_v19 = vpack.c.bf16 %v383_v17, %v382_v16  ;;  %v385_v37 = vmax.f32 %v353_v31, 0.0 }
  0x37   : > { %v364_v50 = vadd.f32 %v1364_v3, %v328_v46 }
  0x38   : > { %v365_v51 = vadd.f32 %v1364_v3, %v329_v47  ;;  %v409_v38 = vpack.c.bf16 %v385_v37, %v384_v36 }
  0x3e   : > { %996 = vmatmul.msk.bf16.gmra.mxu3 %vm426_vm0, %v638_v56  ;;  %v396_v56 = vmax.f32 %v364_v50, 0.0 }
  0x3f   : > { %988 = vmatmul.msk.bf16.gmra.mxu1 %vm426_vm0, %v630_v57  ;;  %v397_v57 = vmax.f32 %v365_v51, 0.0 }
  0x41   : > { %v415_v60 = vpack.c.bf16 %v397_v57, %v396_v56 }
  0x44   : > { %976 = vmatmul.msk.bf16.gmra.mxu2 %vm426_vm0, %v412_v62  ;;  %v294_v62 = vld [vmem:[%s1359_s19 + $0xe0] sm:$0xff] }
  0x45   : > { %968 = vmatmul.msk.bf16.gmra.mxu0 %vm426_vm0, %v404_v63  ;;  %v295_v63 = vld [vmem:[%s1359_s19 + $0xe8] sm:$0xff]  ;;  %v330_v4 = vmul.f32 %v1354_v2, %v294_v62 }
  0x46   : > { %v331_v5 = vmul.f32 %v1354_v2, %v295_v63  ;;  %v642_v12 = vpack.c.bf16 %v295_v63, %v294_v62 }
  0x47   : > { %v366_v8 = vadd.f32 %v1364_v3, %v330_v4 }
  0x48   : > { %v367_v9 = vadd.f32 %v1364_v3, %v331_v5 }
  0x4e   : > { %997 = vmatmul.msk.bf16.gmra.mxu3 %vm426_vm0, %v639_v14  ;;  %v398_v14 = vmax.f32 %v366_v8, 0.0 }
  0x4f   : > { %989 = vmatmul.msk.bf16.gmra.mxu1 %vm426_vm0, %v631_v15  ;;  %v399_v15 = vmax.f32 %v367_v9, 0.0 }
  0x51   : > { %v416_v18 = vpack.c.bf16 %v399_v15, %v398_v14 }
  0x54   : > { %977 = vmatmul.msk.bf16.gmra.mxu2 %vm426_vm0, %v413_v20  ;;  %v296_v20 = vld [vmem:[%s1359_s19 + $0xf0] sm:$0xff] }
  0x55   : > { %969 = vmatmul.msk.bf16.gmra.mxu0 %vm426_vm0, %v405_v21  ;;  %v297_v21 = vld [vmem:[%s1359_s19 + $0xf8] sm:$0xff]  ;;  %v332_v24 = vmul.f32 %v1354_v2, %v296_v20 }
  0x56   : > { %v333_v25 = vmul.f32 %v1354_v2, %v297_v21  ;;  %v643_v32 = vpack.c.bf16 %v297_v21, %v296_v20 }
  0x57   : > { %v368_v28 = vadd.f32 %v1364_v3, %v332_v24 }
  0x58   : > { %v369_v29 = vadd.f32 %v1364_v3, %v333_v25 }
  0x5e   : > { %998 = vmatmul.msk.bf16.gmra.mxu3 %vm426_vm0, %v640_v34  ;;  %v400_v34 = vmax.f32 %v368_v28, 0.0 }
  0x5f   : > { %990 = vmatmul.msk.bf16.gmra.mxu1 %vm426_vm0, %v632_v35  ;;  %v401_v35 = vmax.f32 %v369_v29, 0.0 }
  0x61   : > { %v417_v2 = vpack.c.bf16 %v401_v35, %v400_v34 }
  0x64   : > { %978 = vmatmul.msk.bf16.gmra.mxu2 %vm426_vm0, %v414_v40 }
  0x65   : > { %970 = vmatmul.msk.bf16.gmra.mxu0 %vm426_vm0, %v406_v41 }
  0x6e   : > { %999 = vmatmul.msk.bf16.gmra.mxu3 %vm426_vm0, %v641_v54 }
  0x6f   : > { %991 = vmatmul.msk.bf16.gmra.mxu1 %vm426_vm0, %v633_v55 }
  0x74   : > { %979 = vmatmul.msk.bf16.gmra.mxu2 %vm426_vm0, %v415_v60 }
  0x75   : > { %971 = vmatmul.msk.bf16.gmra.mxu0 %vm426_vm0, %v407_v61 }
  0x7e   : > { %1000 = vmatmul.msk.bf16.gmra.mxu3 %vm426_vm0, %v642_v12 }
  0x7f   : > { %992 = vmatmul.msk.bf16.gmra.mxu1 %vm426_vm0, %v634_v13 }
  0x84   : > { %980 = vmatmul.msk.bf16.gmra.mxu2 %vm426_vm0, %v416_v18 }
  0x85   : > { %972 = vmatmul.msk.bf16.gmra.mxu0 %vm426_vm0, %v408_v19 }
  0x8e   : > { %1001 = vmatmul.msk.bf16.gmra.mxu3 %vm426_vm0, %v643_v32 }
  0x8f   : > { %993 = vmatmul.msk.bf16.gmra.mxu1 %vm426_vm0, %v635_v33 }
  0x94   : > { %981 = vmatmul.msk.bf16.gmra.mxu2 %vm426_vm0, %v417_v2 }
  0x95   : > { %973 = vmatmul.msk.bf16.gmra.mxu0 %vm426_vm0, %v409_v38 }
  0x9c   : > { %v709_v3 = vpop.f32.mrf.mxu1 }
  0x9d   : > { %789 = vst [vmem:[%s1498_s9] sm:$0xff] %v709_v3 }
  0xa1   : > { %v749_v39 = vpop.f32.mrf.mxu3 }
  0xa2   : > { %v484_v40 = vpop.f32.mrf.mxu0  ;;  %805 = vst [vmem:[%s1498_s9 + $0x80] sm:$0xff] %v749_v39 }
  0xa4   : > { %v711_v41 = vpop.f32.mrf.mxu1 }
  0xa5   : > { %790 = vst [vmem:[%s1498_s9 + $0x8] sm:$0xff] %v711_v41 }
  0xa7   : > { %v524_v42 = vpop.f32.mrf.mxu2 }
  0xa9   : > { %v751_v43 = vpop.f32.mrf.mxu3 }
  0xaa   : > { %v486_v44 = vpop.f32.mrf.mxu0  ;;  %806 = vst [vmem:[%s1498_s9 + $0x88] sm:$0xff] %v751_v43 }
  0xab   : > { %v1017_v45 = vpack.c.bf16 %v486_v44, %v484_v40 }
  0xac   : > { %v714_v46 = vpop.f32.mrf.mxu1 }
  0xad   : > { %1018 = vst [vmem:[%s1505_s11] sm:$0xff] %v1017_v45  }
  0xae   : > { %791 = vst [vmem:[%s1498_s9 + $0x10] sm:$0xff] %v714_v46 }
  0xaf   : > { %v526_v47 = vpop.f32.mrf.mxu2 }
  0xb0   : > { %v1057_v48 = vpack.c.bf16 %v526_v47, %v524_v42 }
  0xb1   : > { %v754_v49 = vpop.f32.mrf.mxu3 }
  0xb2   : > { %1101 = vst [vmem:[%s1505_s11 + $0x40] sm:$0xff] %v1057_v48   ;;  %v489_v50 = vpop.f32.mrf.mxu0 }
  0xb3   : > { %807 = vst [vmem:[%s1498_s9 + $0x90] sm:$0xff] %v754_v49 }
  0xb4   : > { %v716_v51 = vpop.f32.mrf.mxu1 }
  0xb5   : > { %792 = vst [vmem:[%s1498_s9 + $0x18] sm:$0xff] %v716_v51 }
  0xb7   : > { %v529_v52 = vpop.f32.mrf.mxu2 }
  0xb9   : > { %v756_v53 = vpop.f32.mrf.mxu3 }
  0xba   : > { %v491_v54 = vpop.f32.mrf.mxu0  ;;  %808 = vst [vmem:[%s1498_s9 + $0x98] sm:$0xff] %v756_v53 }
  0xbb   : > { %v1022_v55 = vpack.c.bf16 %v491_v54, %v489_v50 }
  0xbc   : > { %v719_v56 = vpop.f32.mrf.mxu1 }
  0xbd   : > { %1094 = vst [vmem:[%s1505_s11 + $0x8] sm:$0xff] %v1022_v55  }
  0xbe   : > { %793 = vst [vmem:[%s1498_s9 + $0x20] sm:$0xff] %v719_v56 }
  0xbf   : > { %v531_v57 = vpop.f32.mrf.mxu2 }
  0xc0   : > { %v1062_v58 = vpack.c.bf16 %v531_v57, %v529_v52 }
  0xc1   : > { %v759_v59 = vpop.f32.mrf.mxu3 }
  0xc2   : > { %1102 = vst [vmem:[%s1505_s11 + $0x48] sm:$0xff] %v1062_v58   ;;  %v494_v60 = vpop.f32.mrf.mxu0 }
  0xc3   : > { %809 = vst [vmem:[%s1498_s9 + $0xa0] sm:$0xff] %v759_v59 }
  0xc4   : > { %v721_v61 = vpop.f32.mrf.mxu1 }
  0xc5   : > { %794 = vst [vmem:[%s1498_s9 + $0x28] sm:$0xff] %v721_v61 }
  0xc7   : > { %v534_v62 = vpop.f32.mrf.mxu2 }
  0xc9   : > { %v761_v63 = vpop.f32.mrf.mxu3 }
  0xca   : > { %v496_v0 = vpop.f32.mrf.mxu0  ;;  %810 = vst [vmem:[%s1498_s9 + $0xa8] sm:$0xff] %v761_v63 }
  0xcb   : > { %v1027_v1 = vpack.c.bf16 %v496_v0, %v494_v60 }
  0xcc   : > { %v724_v4 = vpop.f32.mrf.mxu1 }
  0xcd   : > { %1095 = vst [vmem:[%s1505_s11 + $0x10] sm:$0xff] %v1027_v1  }
  0xce   : > { %795 = vst [vmem:[%s1498_s9 + $0x30] sm:$0xff] %v724_v4 }
  0xcf   : > { %v536_v5 = vpop.f32.mrf.mxu2 }
  0xd0   : > { %v1067_v6 = vpack.c.bf16 %v536_v5, %v534_v62 }
  0xd1   : > { %v764_v7 = vpop.f32.mrf.mxu3 }
  0xd2   : > { %1103 = vst [vmem:[%s1505_s11 + $0x50] sm:$0xff] %v1067_v6   ;;  %v499_v8 = vpop.f32.mrf.mxu0 }
  0xd3   : > { %811 = vst [vmem:[%s1498_s9 + $0xb0] sm:$0xff] %v764_v7 }
  0xd4   : > { %v726_v9 = vpop.f32.mrf.mxu1 }
  0xd5   : > { %796 = vst [vmem:[%s1498_s9 + $0x38] sm:$0xff] %v726_v9 }
  0xd7   : > { %v539_v10 = vpop.f32.mrf.mxu2 }
  0xd9   : > { %v766_v11 = vpop.f32.mrf.mxu3 }
  0xda   : > { %v501_v12 = vpop.f32.mrf.mxu0  ;;  %812 = vst [vmem:[%s1498_s9 + $0xb8] sm:$0xff] %v766_v11 }
  0xdb   : > { %v1032_v13 = vpack.c.bf16 %v501_v12, %v499_v8 }
  0xdc   : > { %v729_v14 = vpop.f32.mrf.mxu1 }
  0xdd   : > { %1096 = vst [vmem:[%s1505_s11 + $0x18] sm:$0xff] %v1032_v13  }
  0xde   : > { %797 = vst [vmem:[%s1498_s9 + $0x40] sm:$0xff] %v729_v14 }
  0xdf   : > { %v541_v15 = vpop.f32.mrf.mxu2 }
  0xe0   : > { %v1072_v16 = vpack.c.bf16 %v541_v15, %v539_v10 }
  0xe1   : > { %v769_v17 = vpop.f32.mrf.mxu3 }
  0xe2   : > { %1104 = vst [vmem:[%s1505_s11 + $0x58] sm:$0xff] %v1072_v16   ;;  %v504_v18 = vpop.f32.mrf.mxu0 }
  0xe3   : > { %813 = vst [vmem:[%s1498_s9 + $0xc0] sm:$0xff] %v769_v17 }
  0xe4   : > { %v731_v19 = vpop.f32.mrf.mxu1 }
  0xe5   : > { %798 = vst [vmem:[%s1498_s9 + $0x48] sm:$0xff] %v731_v19 }
  0xe7   : > { %v544_v20 = vpop.f32.mrf.mxu2 }
  0xe9   : > { %v771_v21 = vpop.f32.mrf.mxu3 }
  0xea   : > { %v506_v22 = vpop.f32.mrf.mxu0  ;;  %814 = vst [vmem:[%s1498_s9 + $0xc8] sm:$0xff] %v771_v21 }
  0xeb   : > { %v1037_v23 = vpack.c.bf16 %v506_v22, %v504_v18 }
  0xec   : > { %v734_v24 = vpop.f32.mrf.mxu1 }
  0xed   : > { %1097 = vst [vmem:[%s1505_s11 + $0x20] sm:$0xff] %v1037_v23  }
  0xee   : > { %799 = vst [vmem:[%s1498_s9 + $0x50] sm:$0xff] %v734_v24 }
  0xef   : > { %v546_v25 = vpop.f32.mrf.mxu2 }
  0xf0   : > { %v1077_v26 = vpack.c.bf16 %v546_v25, %v544_v20 }
  0xf1   : > { %v774_v27 = vpop.f32.mrf.mxu3 }
  0xf2   : > { %1105 = vst [vmem:[%s1505_s11 + $0x60] sm:$0xff] %v1077_v26   ;;  %v509_v28 = vpop.f32.mrf.mxu0 }
  0xf3   : > { %815 = vst [vmem:[%s1498_s9 + $0xd0] sm:$0xff] %v774_v27 }
  0xf4   : > { %v736_v29 = vpop.f32.mrf.mxu1 }
  0xf5   : > { %800 = vst [vmem:[%s1498_s9 + $0x58] sm:$0xff] %v736_v29 }
  0xf7   : > { %v549_v30 = vpop.f32.mrf.mxu2 }
  0xf9   : > { %v776_v31 = vpop.f32.mrf.mxu3 }
  0xfa   : > { %v511_v32 = vpop.f32.mrf.mxu0  ;;  %816 = vst [vmem:[%s1498_s9 + $0xd8] sm:$0xff] %v776_v31 }
  0xfb   : > { %v1042_v33 = vpack.c.bf16 %v511_v32, %v509_v28 }
  0xfc   : > { %v739_v34 = vpop.f32.mrf.mxu1 }
  0xfd   : > { %1098 = vst [vmem:[%s1505_s11 + $0x28] sm:$0xff] %v1042_v33  }
  0xfe   : > { %801 = vst [vmem:[%s1498_s9 + $0x60] sm:$0xff] %v739_v34 }
  0xff   : > { %v551_v35 = vpop.f32.mrf.mxu2 }
 0x100   : > { %v1082_v36 = vpack.c.bf16 %v551_v35, %v549_v30 }
 0x101   : > { %v779_v37 = vpop.f32.mrf.mxu3 }
 0x102   : > { %1106 = vst [vmem:[%s1505_s11 + $0x68] sm:$0xff] %v1082_v36   ;;  %v514_v2 = vpop.f32.mrf.mxu0 }
 0x103   : > { %817 = vst [vmem:[%s1498_s9 + $0xe0] sm:$0xff] %v779_v37 }
 0x104   : > { %v741_v38 = vpop.f32.mrf.mxu1 }
 0x105   : > { %802 = vst [vmem:[%s1498_s9 + $0x68] sm:$0xff] %v741_v38 }
 0x107   : > { %v554_v3 = vpop.f32.mrf.mxu2 }
 0x109   : > { %v781_v39 = vpop.f32.mrf.mxu3 }
 0x10a   : > { %v516_v40 = vpop.f32.mrf.mxu0  ;;  %818 = vst [vmem:[%s1498_s9 + $0xe8] sm:$0xff] %v781_v39 }
 0x10b   : > { %v1047_v41 = vpack.c.bf16 %v516_v40, %v514_v2 }
 0x10c   : > { %v744_v42 = vpop.f32.mrf.mxu1 }
 0x10d   : > { %1099 = vst [vmem:[%s1505_s11 + $0x30] sm:$0xff] %v1047_v41  }
 0x10e   : > { %803 = vst [vmem:[%s1498_s9 + $0x70] sm:$0xff] %v744_v42 }
 0x10f   : > { %v556_v43 = vpop.f32.mrf.mxu2 }
 0x110   : > { %v1087_v44 = vpack.c.bf16 %v556_v43, %v554_v3 }
 0x111   : > { %v784_v45 = vpop.f32.mrf.mxu3 }
 0x112   : > { %1107 = vst [vmem:[%s1505_s11 + $0x70] sm:$0xff] %v1087_v44   ;;  %v519_v46 = vpop.f32.mrf.mxu0 }
 0x113   : > { %819 = vst [vmem:[%s1498_s9 + $0xf0] sm:$0xff] %v784_v45 }
 0x114   : > { %v746_v47 = vpop.f32.mrf.mxu1 }
 0x115   : > { %804 = vst [vmem:[%s1498_s9 + $0x78] sm:$0xff] %v746_v47 }
 0x117   : > { %v559_v48 = vpop.f32.mrf.mxu2 }
 0x119   : > { %v786_v49 = vpop.f32.mrf.mxu3 }
 0x11a   : > { %v521_v50 = vpop.f32.mrf.mxu0  ;;  %820 = vst [vmem:[%s1498_s9 + $0xf8] sm:$0xff] %v786_v49 }
 0x11b   : > { %v1052_v51 = vpack.c.bf16 %v521_v50, %v519_v46 }
 0x11c   : > { %1188 = shalt.err (!%p1185_p3)
}
 0x11d   : > { %s1257_s9 = smov 128   ;;  %s1258_s18 = smov 8   ;;  %1100 = vst [vmem:[%s1505_s11 + $0x38] sm:$0xff] %v1052_v51  }
 0x11e   : > { %1112 = dma.vmem_to_hbm [thread:$0]  (%p1334_p5), %s857_s16, 4096, %s859_s17, %s827_s29, %s1257_s9, %s1257_s9, %s1258_s18  }
 0x11f   : > { %s839_s19 = sshll.u32 %s1505_s11, 4  ;;  %s841_s20 = sshll.u32 %s838_s26, 4  ;;  %v561_v52 = vpop.f32.mrf.mxu2  ;;  %s840_s19 = int_to_ptr.vmem [resolvable:$true] %s839_s19  ;;  %s842_s20 = int_to_ptr.hbm [resolvable:$true] %s841_s20 }
 0x120   : > { %v1092_v53 = vpack.c.bf16 %v561_v52, %v559_v48  ;;  %s822_s0 = scalar_lea.sflag [#allocation3], %s1494_s28  ;;  %s1203_s10 = sshra.s32 %s842_s20, 4  ;;  %s1204_s10 = int_to_ptr.hbm [resolvable:$true] %s1203_s10 }
 0x121   : > { %s1205_s12 = scalar_lea.hbm %s1204_s10, 128  ;;  %s1209_s16 = scalar_lea.hbm %s1605_s5, 256 }
 0x122   : > { %1108 = vst [vmem:[%s1505_s11 + $0x78] sm:$0xff] %v1092_v53   ;;  %p1206_p4 = scmp.ne.s32.totalorder %s1204_s10, %s1205_s12  ;;  %p1210_p9 = scmp.lt.s32.totalorder %s1204_s10, %s1605_s5 }
 0x123   : > { %p1211_p10 = scmp.lt.s32.totalorder %s1209_s16, %s1205_s12 }
 0x124   : > { %p1207_p7 = pnand %p1206_p4, %p1334_p5 }
 0x125   : > { %p1212_p11 = por %p1211_p10, %p1210_p9 }
 0x126   : > { %p1208_p8 = pneg %p1207_p7 }
 0x128   : > { %p1213_p12 = pnand %p1212_p11, %p1208_p8 }
 0x12a   : > { %1216 = shalt.err (!%p1213_p12)
}
 0x12b   : > { %s1259_s28 = smov 64   ;;  %s1260_s11 = smov 4  }
 0x12c   : > { %1111 = dma.vmem_to_hbm [thread:$0]  (%p1334_p5), %s840_s19, 2048, %s842_s20, %s822_s0, %s1259_s28, %s1259_s28, %s1260_s11  }
 0x12d PF: > { %p1122_p13 = scmp.ge.s32.totalorder %s1255_s24, 2  ;;  %s873_s29 = sand.u32 1, %s1243_s21  }
 0x12e   : > { %s874_s14 = scalar_lea.sflag [#allocation3], %s873_s29 }
 0x12f   : > { %p1116_p0 = pnand %p1122_p13, %p1338_p6 }
 0x131   : > { %p1117_p1 = pneg %p1116_p0 }
 0x133   : > { %1234 = dma.done.wait (%p1117_p1), %s874_s14, 2048  }
 0x134   : > { %1236 = vsyncadd (%p1117_p1), %s874_s14, 4294965248  ;;  %s884_s15 = scalar_lea.sflag [#allocation5], %s873_s29 }
 0x135   : > { %1238 = dma.done.wait (%p1117_p1), %s884_s15, 4096  }
 0x136   : > { %1240 = vsyncadd (%p1117_p1), %s884_s15, 4294963200  ;;  %p20_p5 = scmp.ge.s32.totalorder %s1321_s27, 4   ;;  %s1611_s21 = smov %s1247_s22 }
 0x137   : > { %s1612_s22 = smov %s1251_s23  ;;  %s1613_s23 = smov %s1332_s30 }
 0x138   : > { %s1614_s24 = smov %s1321_s27  ;;  %22 = sbr.rel (!%p20_p5) target bundleno = 7 (0x7), region = 92 }
 0x13d   :  { %890 = vsyncpa [#allocation3], 1 }
 0x13e   :  { %892 = vsyncpa [#allocation3 + $0x1], 1 }
 0x13f   :  { %893 = vsyncpa [#allocation5], 1 }
 0x140   :  { %895 = vsyncpa [#allocation5 + $0x1], 1 }

</bundles_post_ra>
